<compile_context>
chip_gen: v5e
topology: v5e:2x2
jax: 0.10.0
libtpu: 0.0.40
codegen_flags: <defaults>
</compile_context>

<pallas_src>
import jax
import jax.numpy as jnp
from jax.experimental import pallas as pl
from jax.experimental.pallas import tpu as pltpu


def _round_up(n, m):
    return ((n + m - 1) // m) * m


def linnet_kernel(x_ref,
                  w1_ref, b1_ref,
                  w2_ref, b2_ref,
                  w3_ref, b3_ref,
                  w4_ref, b4_ref,
                  o_ref):
    # Compute dtype follows the weights (f32 or bf16); accumulation is f32.
    cdt = w1_ref.dtype
    x = x_ref[...]

    h = jnp.dot(x, w1_ref[...], preferred_element_type=jnp.float32) + b1_ref[...]
    h = jnp.maximum(h, 0.0).astype(cdt)

    h = jnp.dot(h, w2_ref[...], preferred_element_type=jnp.float32) + b2_ref[...]
    h = jnp.maximum(h, 0.0).astype(cdt)

    h = jnp.dot(h, w3_ref[...], preferred_element_type=jnp.float32) + b3_ref[...]
    h = jnp.maximum(h, 0.0).astype(cdt)

    logits = jnp.dot(h, w4_ref[...], preferred_element_type=jnp.float32) + b4_ref[...]

    # 2-class log_softmax, closed form (no cross-lane reductions):
    #   out0 = -softplus(-(l0-l1)),  out1 = -softplus(l0-l1)
    d = logits[:, 0:1] - logits[:, 1:2]
    sp_pos = jnp.maximum(d, 0.0) + jnp.log1p(jnp.exp(-jnp.abs(d)))  # softplus(d)
    sp_neg = sp_pos - d                                             # softplus(-d)
    out = jnp.concatenate([-sp_neg, -sp_pos], axis=1)
    o_ref[...] = out.astype(o_ref.dtype)


def linnet_forward(x, params, *, tile_b=2048, compute_dtype=jnp.float32):
    """x: [B, 30] float32. params: dict of (w, b); w as [in, out], b as [1, out]."""
    B = x.shape[0]
    assert x.shape[1] == 30

    w1, b1 = params["fc1"]
    w2, b2 = params["fc2"]
    w3, b3 = params["fc3"]
    w4, b4 = params["fc4"]

    # Batch tile: multiple of 8 sublanes, capped so tiny batches stay one step.
    tb = min(int(tile_b), _round_up(max(B, 8), 8))
    tb = max(8, (tb // 8) * 8)
    B_pad = _round_up(B, tb)
    grid = (B_pad // tb,)

    # One-time padding: features 30 -> 32 (zeros; product unchanged), tail rows
    # of the batch zero-padded so every tile is full.
    xp = jnp.pad(x, ((0, B_pad - B), (0, 2))).astype(compute_dtype)
    w1p = jnp.pad(w1, ((0, 2), (0, 0))).astype(compute_dtype)
    w2c, w3c, w4c = (w.astype(compute_dtype) for w in (w2, w3, w4))
    b1f, b2f, b3f, b4f = (b.astype(jnp.float32) for b in (b1, b2, b3, b4))

    def resident(shape):
        # Weights/biases: same block every grid step -> DMA'd once, VMEM-resident.
        return pl.BlockSpec(shape, lambda i: (0, 0))

    itemsize = jnp.dtype(compute_dtype).itemsize
    weight_bytes = sum(int(a.size) * itemsize for a in (w1p, w2c, w3c, w4c)) \
        + sum(int(a.size) * 4 for a in (b1f, b2f, b3f, b4f))
    cost = pl.CostEstimate(
        flops=2 * B_pad * (32 * 32 + 32 * 64 + 64 * 32 + 32 * 2),
        transcendentals=2 * B_pad,
        bytes_accessed=int(xp.size) * itemsize + B_pad * 2 * 4 + weight_bytes,
    )

    out = pl.pallas_call(
        linnet_kernel,
        out_shape=jax.ShapeDtypeStruct((B_pad, 2), jnp.float32),
        grid=grid,
        in_specs=[
            pl.BlockSpec((tb, 32), lambda i: (i, 0)),   # x tile
            resident((32, 32)), resident((1, 32)),       # fc1
            resident((32, 64)), resident((1, 64)),       # fc2
            resident((64, 32)), resident((1, 32)),       # fc3
            resident((32, 2)),  resident((1, 2)),        # fc4
        ],
        out_specs=pl.BlockSpec((tb, 2), lambda i: (i, 0)),
        compiler_params=pltpu.CompilerParams(
            dimension_semantics=("parallel",),           # shard batch across TCs (v7x)
            vmem_limit_bytes=64 * 1024 * 1024,
        ),
        cost_estimate=cost,
    )(xp, w1p, b1f, w2c, b2f, w3c, b3f, w4c, b4f)

    return out[:B]


def init_linear(key, fan_in, fan_out):
    """PyTorch-style init: U(-1/sqrt(fan_in), 1/sqrt(fan_in)).
    Weight stored as [in, out], bias as [1, out]."""
    kw, kb = jax.random.split(key)
    bound = 1.0 / jnp.sqrt(jnp.float32(fan_in))
    w = jax.random.uniform(kw, (fan_in, fan_out), jnp.float32, -bound, bound)
    b = jax.random.uniform(kb, (1, fan_out), jnp.float32, -bound, bound)
    return w, b


def make_params(key):
    k1, k2, k3, k4 = jax.random.split(key, 4)
    return {
        "fc1": init_linear(k1, 30, 32),
        "fc2": init_linear(k2, 32, 64),
        "fc3": init_linear(k3, 64, 32),
        "fc4": init_linear(k4, 32, 2),
    }


def reference_forward(x, params):
    """Pure-JAX reference of the same computation."""
    w1, b1 = params["fc1"]
    w2, b2 = params["fc2"]
    w3, b3 = params["fc3"]
    w4, b4 = params["fc4"]
    h = jax.nn.relu(x @ w1 + b1)
    h = jax.nn.relu(h @ w2 + b2)
    h = jax.nn.relu(h @ w3 + b3)
    logits = h @ w4 + b4
    return jax.nn.log_softmax(logits, axis=1)


if __name__ == "__main__":
    key = jax.random.PRNGKey(0)
    kx, kp = jax.random.split(key)

    B = 50  # small, not a multiple of the tile -> exercises tail padding
    x = jax.random.normal(kx, (B, 30), jnp.float32)
    params = make_params(kp)
    ref = reference_forward(x, params)

    # f32 path, small tile to exercise a multi-step grid.
    out = jax.block_until_ready(linnet_forward(x, params, tile_b=16))
    assert out.shape == (B, 2), out.shape
    assert jnp.allclose(out, ref, atol=1e-5, rtol=1e-5), "f32 mismatch vs reference"

    # bf16 compute path (MXU-native), f32 accumulation; looser tolerance.
    out_bf16 = jax.block_until_ready(
        linnet_forward(x, params, compute_dtype=jnp.bfloat16))
    assert out_bf16.shape == (B, 2)
    assert jnp.allclose(out_bf16, ref, atol=3e-2, rtol=3e-2), "bf16 mismatch vs reference"

    print("KERNEL_OK")
</pallas_src>

<mosaic_0001>
module attributes {stable_mosaic.version = 11 : i64} {
  func.func @linnet_kernel(%arg0: i32, %arg1: memref<16x32xf32, #tpu.memory_space<vmem>>, %arg2: memref<32x32xf32, #tpu.memory_space<vmem>>, %arg3: memref<1x32xf32, #tpu.memory_space<vmem>>, %arg4: memref<32x64xf32, #tpu.memory_space<vmem>>, %arg5: memref<1x64xf32, #tpu.memory_space<vmem>>, %arg6: memref<64x32xf32, #tpu.memory_space<vmem>>, %arg7: memref<1x32xf32, #tpu.memory_space<vmem>>, %arg8: memref<32x2xf32, #tpu.memory_space<vmem>>, %arg9: memref<1x2xf32, #tpu.memory_space<vmem>>, %arg10: memref<16x2xf32, #tpu.memory_space<vmem>>) attributes {dimension_semantics = [#tpu.dimension_semantics<parallel>], iteration_bounds = array<i64: 4>, scalar_prefetch = 0 : i64, scratch_operands = 0 : i64, tpu.core_type = #tpu.core_type<tc>, window_params = [{transform_indices = @transform_0, window_bounds = array<i64: 16, 32>}, {pipeline_mode = #tpu.pipeline_mode<synchronous>, transform_indices = @transform_1, window_bounds = array<i64: 32, 32>}, {pipeline_mode = #tpu.pipeline_mode<synchronous>, transform_indices = @transform_2, window_bounds = array<i64: 1, 32>}, {pipeline_mode = #tpu.pipeline_mode<synchronous>, transform_indices = @transform_3, window_bounds = array<i64: 32, 64>}, {pipeline_mode = #tpu.pipeline_mode<synchronous>, transform_indices = @transform_4, window_bounds = array<i64: 1, 64>}, {pipeline_mode = #tpu.pipeline_mode<synchronous>, transform_indices = @transform_5, window_bounds = array<i64: 64, 32>}, {pipeline_mode = #tpu.pipeline_mode<synchronous>, transform_indices = @transform_6, window_bounds = array<i64: 1, 32>}, {pipeline_mode = #tpu.pipeline_mode<synchronous>, transform_indices = @transform_7, window_bounds = array<i64: 32, 2>}, {pipeline_mode = #tpu.pipeline_mode<synchronous>, transform_indices = @transform_8, window_bounds = array<i64: 1, 2>}, {transform_indices = @transform_9, window_bounds = array<i64: 16, 2>}]} {
    %c0 = arith.constant 0 : index
    %c0_0 = arith.constant 0 : index
    %0 = vector.load %arg1[%c0, %c0_0] : memref<16x32xf32, #tpu.memory_space<vmem>>, vector<16x32xf32>
    %c0_1 = arith.constant 0 : index
    %c0_2 = arith.constant 0 : index
    %1 = vector.load %arg2[%c0_1, %c0_2] : memref<32x32xf32, #tpu.memory_space<vmem>>, vector<32x32xf32>
    %cst = arith.constant dense<0.000000e+00> : vector<16x32xf32>
    %2 = tpu.matmul %0, %1, %cst {dimension_numbers = #tpu.dot_dimension_numbers<[1], [0], [0], [1], [0, 0, 1, 1], [], []>} : vector<16x32xf32>, vector<32x32xf32>, vector<16x32xf32> -> vector<16x32xf32>
    %c0_3 = arith.constant 0 : index
    %c0_4 = arith.constant 0 : index
    %3 = vector.load %arg3[%c0_3, %c0_4] : memref<1x32xf32, #tpu.memory_space<vmem>>, vector<1x32xf32>
    %4 = vector.broadcast %3 : vector<1x32xf32> to vector<16x32xf32>
    %5 = arith.addf %2, %4 : vector<16x32xf32>
    %cst_5 = arith.constant 0.000000e+00 : f32
    %6 = vector.broadcast %cst_5 : f32 to vector<16x32xf32>
    %7 = arith.maximumf %5, %6 : vector<16x32xf32>
    %c0_6 = arith.constant 0 : index
    %c0_7 = arith.constant 0 : index
    %8 = vector.load %arg4[%c0_6, %c0_7] : memref<32x64xf32, #tpu.memory_space<vmem>>, vector<32x64xf32>
    %cst_8 = arith.constant dense<0.000000e+00> : vector<16x64xf32>
    %9 = tpu.matmul %7, %8, %cst_8 {dimension_numbers = #tpu.dot_dimension_numbers<[1], [0], [0], [1], [0, 0, 1, 1], [], []>} : vector<16x32xf32>, vector<32x64xf32>, vector<16x64xf32> -> vector<16x64xf32>
    %c0_9 = arith.constant 0 : index
    %c0_10 = arith.constant 0 : index
    %10 = vector.load %arg5[%c0_9, %c0_10] : memref<1x64xf32, #tpu.memory_space<vmem>>, vector<1x64xf32>
    %11 = vector.broadcast %10 : vector<1x64xf32> to vector<16x64xf32>
    %12 = arith.addf %9, %11 : vector<16x64xf32>
    %cst_11 = arith.constant 0.000000e+00 : f32
    %13 = vector.broadcast %cst_11 : f32 to vector<16x64xf32>
    %14 = arith.maximumf %12, %13 : vector<16x64xf32>
    %c0_12 = arith.constant 0 : index
    %c0_13 = arith.constant 0 : index
    %15 = vector.load %arg6[%c0_12, %c0_13] : memref<64x32xf32, #tpu.memory_space<vmem>>, vector<64x32xf32>
    %cst_14 = arith.constant dense<0.000000e+00> : vector<16x32xf32>
    %16 = tpu.matmul %14, %15, %cst_14 {dimension_numbers = #tpu.dot_dimension_numbers<[1], [0], [0], [1], [0, 0, 1, 1], [], []>} : vector<16x64xf32>, vector<64x32xf32>, vector<16x32xf32> -> vector<16x32xf32>
    %c0_15 = arith.constant 0 : index
    %c0_16 = arith.constant 0 : index
    %17 = vector.load %arg7[%c0_15, %c0_16] : memref<1x32xf32, #tpu.memory_space<vmem>>, vector<1x32xf32>
    %18 = vector.broadcast %17 : vector<1x32xf32> to vector<16x32xf32>
    %19 = arith.addf %16, %18 : vector<16x32xf32>
    %cst_17 = arith.constant 0.000000e+00 : f32
    %20 = vector.broadcast %cst_17 : f32 to vector<16x32xf32>
    %21 = arith.maximumf %19, %20 : vector<16x32xf32>
    %c0_18 = arith.constant 0 : index
    %c0_19 = arith.constant 0 : index
    %22 = vector.load %arg8[%c0_18, %c0_19] : memref<32x2xf32, #tpu.memory_space<vmem>>, vector<32x2xf32>
    %cst_20 = arith.constant dense<0.000000e+00> : vector<16x2xf32>
    %23 = tpu.matmul %21, %22, %cst_20 {dimension_numbers = #tpu.dot_dimension_numbers<[1], [0], [0], [1], [0, 0, 1, 1], [], []>} : vector<16x32xf32>, vector<32x2xf32>, vector<16x2xf32> -> vector<16x2xf32>
    %c0_21 = arith.constant 0 : index
    %c0_22 = arith.constant 0 : index
    %24 = vector.load %arg9[%c0_21, %c0_22] : memref<1x2xf32, #tpu.memory_space<vmem>>, vector<1x2xf32>
    %25 = vector.broadcast %24 : vector<1x2xf32> to vector<16x2xf32>
    %26 = arith.addf %23, %25 : vector<16x2xf32>
    %27 = vector.extract_strided_slice %26 {offsets = [0, 0], sizes = [16, 1], strides = [1, 1]} : vector<16x2xf32> to vector<16x1xf32>
    %28 = vector.extract_strided_slice %26 {offsets = [0, 1], sizes = [16, 1], strides = [1, 1]} : vector<16x2xf32> to vector<16x1xf32>
    %29 = arith.subf %27, %28 : vector<16x1xf32>
    %cst_23 = arith.constant 0.000000e+00 : f32
    %30 = vector.broadcast %cst_23 : f32 to vector<16x1xf32>
    %31 = arith.maximumf %29, %30 : vector<16x1xf32>
    %32 = math.absf %29 : vector<16x1xf32>
    %cst_24 = arith.constant 0.000000e+00 : f32
    %33 = vector.broadcast %cst_24 : f32 to vector<16x1xf32>
    %34 = arith.subf %33, %32 : vector<16x1xf32>
    %35 = math.exp %34 : vector<16x1xf32>
    %36 = math.log1p %35 : vector<16x1xf32>
    %37 = arith.addf %31, %36 : vector<16x1xf32>
    %38 = arith.subf %37, %29 : vector<16x1xf32>
    %cst_25 = arith.constant 0.000000e+00 : f32
    %39 = vector.broadcast %cst_25 : f32 to vector<16x1xf32>
    %40 = arith.subf %39, %38 : vector<16x1xf32>
    %cst_26 = arith.constant 0.000000e+00 : f32
    %41 = vector.broadcast %cst_26 : f32 to vector<16x1xf32>
    %42 = arith.subf %41, %37 : vector<16x1xf32>
    %43 = tpu.concatenate %40, %42 in 1 : vector<16x1xf32>, vector<16x1xf32> -> vector<16x2xf32>
    %c0_27 = arith.constant 0 : index
    %c0_28 = arith.constant 0 : index
    %44 = vector.load %arg10[%c0_27, %c0_28] : memref<16x2xf32, #tpu.memory_space<vmem>>, vector<16x2xf32>
    tpu.vector_store %arg10[%c0_27, %c0_28], %43 {strides = array<i32>} : memref<16x2xf32, #tpu.memory_space<vmem>>, vector<16x2xf32>,
    return
  }
  func.func @transform_0(%arg0: i32) -> (i32, i32) {
    %c0_i32 = arith.constant 0 : i32
    %c0_i32_0 = arith.constant 0 : i32
    return %arg0, %c0_i32 : i32, i32
  }
  func.func @transform_1(%arg0: i32) -> (i32, i32) {
    %c0_i32 = arith.constant 0 : i32
    %c0_i32_0 = arith.constant 0 : i32
    %c0_i32_1 = arith.constant 0 : i32
    return %c0_i32, %c0_i32_0 : i32, i32
  }
  func.func @transform_2(%arg0: i32) -> (i32, i32) {
    %c0_i32 = arith.constant 0 : i32
    %c0_i32_0 = arith.constant 0 : i32
    %c0_i32_1 = arith.constant 0 : i32
    return %c0_i32, %c0_i32_0 : i32, i32
  }
  func.func @transform_3(%arg0: i32) -> (i32, i32) {
    %c0_i32 = arith.constant 0 : i32
    %c0_i32_0 = arith.constant 0 : i32
    %c0_i32_1 = arith.constant 0 : i32
    return %c0_i32, %c0_i32_0 : i32, i32
  }
  func.func @transform_4(%arg0: i32) -> (i32, i32) {
    %c0_i32 = arith.constant 0 : i32
    %c0_i32_0 = arith.constant 0 : i32
    %c0_i32_1 = arith.constant 0 : i32
    return %c0_i32, %c0_i32_0 : i32, i32
  }
  func.func @transform_5(%arg0: i32) -> (i32, i32) {
    %c0_i32 = arith.constant 0 : i32
    %c0_i32_0 = arith.constant 0 : i32
    %c0_i32_1 = arith.constant 0 : i32
    return %c0_i32, %c0_i32_0 : i32, i32
  }
  func.func @transform_6(%arg0: i32) -> (i32, i32) {
    %c0_i32 = arith.constant 0 : i32
    %c0_i32_0 = arith.constant 0 : i32
    %c0_i32_1 = arith.constant 0 : i32
    return %c0_i32, %c0_i32_0 : i32, i32
  }
  func.func @transform_7(%arg0: i32) -> (i32, i32) {
    %c0_i32 = arith.constant 0 : i32
    %c0_i32_0 = arith.constant 0 : i32
    %c0_i32_1 = arith.constant 0 : i32
    return %c0_i32, %c0_i32_0 : i32, i32
  }
  func.func @transform_8(%arg0: i32) -> (i32, i32) {
    %c0_i32 = arith.constant 0 : i32
    %c0_i32_0 = arith.constant 0 : i32
    %c0_i32_1 = arith.constant 0 : i32
    return %c0_i32, %c0_i32_0 : i32, i32
  }
  func.func @transform_9(%arg0: i32) -> (i32, i32) {
    %c0_i32 = arith.constant 0 : i32
    %c0_i32_0 = arith.constant 0 : i32
    return %arg0, %c0_i32 : i32, i32
  }
}

</mosaic_0001>

<bundles_post_ra>
// kernel: tpu_custom_call.1
= control target key start
LH: loop header
LB: loop body
LE: loop exit
PB: predicated region body
PF: predicated region fallthrough
CT: control target
= control target key end

     0   :  { %s715_s30 = smov 0   ;;  %s817_s0 = inlined_call_operand.vmem [shape: f32[64,32], index: 0, kind: input, shape index: {}]   ;;  %s818_s1 = inlined_call_operand.vmem [shape: f32[32,32], index: 1, kind: input, shape index: {}]   ;;  %s819_s2 = inlined_call_operand.vmem [shape: f32[1,32], index: 2, kind: input, shape index: {}]   ;;  %s820_s3 = inlined_call_operand.vmem [shape: f32[32,64], index: 3, kind: input, shape index: {}]   ;;  %s821_s4 = inlined_call_operand.vmem [shape: f32[1,64], index: 4, kind: input, shape index: {}]   ;;  %s822_s5 = inlined_call_operand.vmem [shape: f32[64,32], index: 5, kind: input, shape index: {}]   ;;  %s823_s6 = inlined_call_operand.vmem [shape: f32[1,32], index: 6, kind: input, shape index: {}]   ;;  %s824_s7 = inlined_call_operand.vmem [shape: f32[32,2], index: 7, kind: input, shape index: {}]   ;;  %s825_s8 = inlined_call_operand.vmem [shape: f32[1,2], index: 8, kind: input, shape index: {}]   ;;  %s826_s9 = inlined_call_operand.vmem [shape: f32[64,2], index: 9, kind: output, shape index: {}]  }
   0x1 LB: > { %s614_s10 = sadd.s32 4294967295, %s661_s30   ;;  %p618_p0 = scmp.ge.s32.totalorder %s661_s30, 1  ;;  %s661_s30 = sphi %s715_s30, %s19_s30  }
   0x2   : > { %p288_p1 = scmp.lt.s32.totalorder %s661_s30, 5 }
   0x4   : > { %p289_p2 = pnand %p618_p0, %p288_p1 }
   0x5   : > { %s619_s15 = sshll.u32 (!%p289_p2), %s614_s10, 1  ;;  %s663_s28 = smov (!%p289_p2), 127  }
   0x6   : > { %292 = sbr.rel (%p289_p2) target bundleno = 820 (0x334), region = 56  ;;  %p325_p3 = scmp.lt.s32.totalorder (!%p289_p2), %s619_s15, 7 }
   0x7   : > { %s664_s29 = smov (!%p289_p2), 1  }
   0xb   : > { %v341_v0 = vld [vmem:[%s818_s1 + $0x18] sm:$0xff]  ;;  %v340_v1 = vld [vmem:[%s818_s1 + $0x10] sm:$0xff]  ;;  %v339_v3 = vld [vmem:[%s818_s1 + $0x8] sm:$0xff]  ;;  %s828_s15 = smov (!%p325_p3, %s619_s15), 7  ;;  %vm346_vm0 = vcmask 261120   ;;  %vm429_vm1 = vcmask 523264  }
   0xc   : > { %365 = vmatpush.msra.mxu0 %v341_v0  ;;  %v381_v2 = vld [vmem:[%s820_s3 + $0x18] sm:$0xff]  ;;  %v338_v4 = vld [vmem:[%s818_s1] sm:$0xff]  ;;  %s620_s22 = sshll.u32 %s828_s15, 3  ;;  %v380_v7 = vld [vmem:[%s820_s3 + $0x10] sm:$0xff]  ;;  %vm552_vm4 = vcmask 7168   ;;  %vm555_vm5 = vcmask 15360  }
   0xd   : > { %404 = vmatpush.msra.mxu1 %v381_v2  ;;  %s328_s25 = scalar_lea.vmem %s817_s0, %s620_s22  ;;  %v379_v8 = vld [vmem:[%s820_s3 + $0x8] sm:$0xff]  ;;  %v378_v9 = vld [vmem:[%s820_s3] sm:$0xff]  ;;  %v424_v10 = vld [vmem:[%s822_s5 + $0x38] sm:$0xff]  ;;  %s334_s12 = scalar_lea.vmem %s826_s9, %s620_s22 }
   0xe   : > { %366 = vmatpush.msra.mxu0 %v340_v1  ;;  %v336_v5 = vld [vmem:[%s328_s25] sm:$0xff]  ;;  %v337_v6 = vld [vmem:[%s328_s25 + $0x8] sm:$0xff]  ;;  %v423_v11 = vld [vmem:[%s822_s5 + $0x30] sm:$0xff]  ;;  %444 = vmatpush.msra.mxu2 %v424_v10 }
   0xf   : > { %405 = vmatpush.msra.mxu1 %v380_v7  ;;  %v422_v12 = vld [vmem:[%s822_s5 + $0x28] sm:$0xff]  ;;  %v421_v13 = vld [vmem:[%s822_s5 + $0x20] sm:$0xff]  ;;  %v420_v14 = vld [vmem:[%s822_s5 + $0x18] sm:$0xff] }
  0x10   : > { %367 = vmatpush.msra.mxu0 %v339_v3  ;;  %445 = vmatpush.msra.mxu2 %v423_v11  ;;  %v643_v15 = vld [vmem:[%s819_s2] ss:$0 sm:$0xff]  ;;  %v419_v22 = vld [vmem:[%s822_s5 + $0x10] sm:$0xff]  ;;  %v418_v23 = vld [vmem:[%s822_s5 + $0x8] sm:$0xff] }
  0x11   : > { %406 = vmatpush.msra.mxu1 %v379_v8  ;;  %v417_v24 = vld [vmem:[%s822_s5] sm:$0xff]  ;;  %v464_v25 = vld [vmem:[%s824_s7 + $0x18] sm:$0xff]  ;;  %v463_v33 = vld [vmem:[%s824_s7 + $0x10] sm:$0xff] }
  0x12   : > { %368 = vmatpush.msra.mxu0 %v338_v4  ;;  %446 = vmatpush.msra.mxu2 %v422_v12  ;;  %v644_v26 = vld [vmem:[%s821_s4] ss:$0 sm:$0xff]  ;;  %v462_v34 = vld [vmem:[%s824_s7 + $0x8] sm:$0xff] }
  0x13   : > { %623 = vmatmul.msk.f32.vlgmr.msra.gmra.mxu0 %vm346_vm0, %v336_v5  ;;  %407 = vmatpush.msra.mxu1 %v378_v9  ;;  %v461_v35 = vld [vmem:[%s824_s7] sm:$0xff] }
  0x14   : > { %447 = vmatpush.msra.mxu2 %v421_v13  ;;  %487 = vmatpush.msra.mxu3 %v464_v25  ;;  %v645_v36 = vld [vmem:[%s823_s6] ss:$0 sm:$0xff] }
  0x15   : > { %v646_v43 = vld [vmem:[%s825_s8] ss:$0 sm:$0xff] }
  0x16   : > { %448 = vmatpush.msra.mxu2 %v420_v14  ;;  %488 = vmatpush.msra.mxu3 %v463_v33 }
  0x18   : > { %449 = vmatpush.msra.mxu2 %v419_v22  ;;  %489 = vmatpush.msra.mxu3 %v462_v34 }
  0x1a   : > { %450 = vmatpush.msra.mxu2 %v418_v23  ;;  %490 = vmatpush.msra.mxu3 %v461_v35 }
  0x1b   : > { %624 = vmatmul.msk.f32.gmra.mxu0 %vm346_vm0, %v337_v6 }
  0x1c   : > { %451 = vmatpush.msra.mxu2 %v417_v24 }
  0x90   : > { %v370_v16 = vpop.f32.mrf.mxu0 }
  0x91   : > { %v371_v17 = vadd.f32 %v643_v15, %v370_v16 }
  0x93   : > { %v376_v18 = vmax.f32 %v371_v17, 0.0 }
  0x95   : > { %625 = vmatmul.msk.f32.vlgmr.msra.gmra.mxu1 %vm346_vm0, %v376_v18 }
  0x98   : > { %v373_v19 = vpop.f32.mrf.mxu0 }
  0x99   : > { %v374_v20 = vadd.f32 %v643_v15, %v373_v19 }
  0x9b   : > { %v377_v21 = vmax.f32 %v374_v20, 0.0 }
  0x9d   : > { %626 = vmatmul.msk.f32.gmra.mxu1 %vm346_vm0, %v377_v21 }
 0x112   : > { %v409_v27 = vpop.f32.mrf.mxu1 }
 0x113   : > { %v410_v28 = vadd.f32 %v644_v26, %v409_v27 }
 0x115   : > { %v415_v29 = vmax.f32 %v410_v28, 0.0 }
 0x117   : > { %627 = vmatmul.msk.f32.vlgmr.msra.gmra.mxu2 %vm429_vm1, %v415_v29 }
 0x11a   : > { %v412_v30 = vpop.f32.mrf.mxu1 }
 0x11b   : > { %v413_v31 = vadd.f32 %v644_v26, %v412_v30 }
 0x11d   : > { %v416_v32 = vmax.f32 %v413_v31, 0.0 }
 0x11f   : > { %628 = vmatmul.msk.f32.gmra.mxu2 %vm429_vm1, %v416_v32 }
 0x19a   : > { %v453_v37 = vpop.f32.mrf.mxu2 }
 0x19b   : > { %v454_v38 = vadd.f32 %v645_v36, %v453_v37 }
 0x19d   : > { %v459_v39 = vmax.f32 %v454_v38, 0.0 }
 0x19f   : > { %629 = vmatmul.msk.f32.vlgmr.msra.gmra.mxu3 %vm346_vm0, %v459_v39 }
 0x1a2   : > { %v456_v40 = vpop.f32.mrf.mxu2 }
 0x1a3   : > { %v457_v41 = vadd.f32 %v645_v36, %v456_v40 }
 0x1a5   : > { %v460_v42 = vmax.f32 %v457_v41, 0.0 }
 0x1a7   : > { %630 = vmatmul.msk.f32.gmra.mxu3 %vm346_vm0, %v460_v42 }
 0x222   : > { %v492_v44 = vpop.f32.mrf.mxu3 }
 0x223   : > { %v493_v45 = vadd.f32 %v646_v43, %v492_v44 }
 0x225   : > { %500 = vrot.lane.b32.xlu0 %v493_v45, %s663_s28 }
 0x22a   : > { %v495_v46 = vpop.f32.mrf.mxu3 }
 0x22b   : > { %v496_v47 = vadd.f32 %v646_v43, %v495_v46 }
 0x22d   : > { %502 = vrot.lane.b32.xlu0 %v496_v47, %s663_s28 }
 0x297   : > { %v501_v48 = vpop.permute.xlu0 %500 }
 0x298   : > { %v506_v49 = vsub.f32 %v493_v45, %v501_v48 }
 0x29a   : > { %v510_v50 = vand.u32 2147483647, %v506_v49  ;;  %v508_v5 = vmax.f32 %v506_v49, 0.0 }
 0x29c   : > { %v512_v51 = vsub.f32 0.0, %v510_v50 }
 0x29e   : > { %v514_v52 = vmul.f32 1.442695, %v512_v51 }
 0x29f   : > { %v503_v53 = vpop.permute.xlu0 %502 }
 0x2a0   : > { %647 = vpow2.f32 %v514_v52  ;;  %v507_v54 = vsub.f32 %v496_v47, %v503_v53 }
 0x2a2   : > { %v511_v55 = vand.u32 2147483647, %v507_v54  ;;  %v509_v15 = vmax.f32 %v507_v54, 0.0 }
 0x2a4   : > { %v513_v56 = vsub.f32 0.0, %v511_v55 }
 0x2a6   : > { %v648_v57 = vpop.eup %647  ;;  %v516_v58 = vmul.f32 1.442695, %v513_v56 }
 0x2a7   : > { %v518_v59 = vadd.f32 1.0, %v648_v57  ;;  %v521_v60 = vmul.f32 -0.5, %v648_v57  ;;  %v524_v62 = vand.u32 2147483647, %v648_v57 }
 0x2a8   : > { %649 = vpow2.f32 %v516_v58 }
 0x2a9   : > { %651 = vlog2.f32 %v518_v59  ;;  %v522_v61 = vadd.f32 1.0, %v521_v60  ;;  %vm525_vm2 = vcmp.lt.f32.partialorder %v524_v62, 0.0004427343 }
 0x2ab   : > { %v523_v4 = vmul.f32 %v648_v57, %v522_v61 }
 0x2ae   : > { %v650_v63 = vpop.eup %649 }
 0x2af   : > { %v652_v0 = vpop.eup %651  ;;  %v527_v1 = vadd.f32 1.0, %v650_v63  ;;  %v530_v2 = vmul.f32 -0.5, %v650_v63  ;;  %v533_v9 = vand.u32 2147483647, %v650_v63 }
 0x2b0   : > { %v520_v3 = vmul.f32 0.6931472, %v652_v0 }
 0x2b1   : > { %653 = vlog2.f32 %v527_v1  ;;  %v531_v8 = vadd.f32 1.0, %v530_v2  ;;  %vm534_vm3 = vcmp.lt.f32.partialorder %v533_v9, 0.0004427343 }
 0x2b2   : > { %v526_v6 = vsel %vm525_vm2, %v523_v4, %v520_v3 }
 0x2b3   : > { %v536_v7 = vadd.f32 %v526_v6, %v508_v5  ;;  %v532_v14 = vmul.f32 %v650_v63, %v531_v8 }
 0x2b5   : > { %v542_v10 = vsub.f32 0.0, %v536_v7  ;;  %v538_v11 = vsub.f32 %v536_v7, %v506_v49 }
 0x2b7   : > { %v654_v12 = vpop.eup %653  ;;  %546 = vrot.lane.b32.xlu1 %v542_v10, %s664_s29  ;;  %v540_v20 = vsub.f32 0.0, %v538_v11 }
 0x2b8   : > { %v529_v13 = vmul.f32 0.6931472, %v654_v12 }
 0x2ba   : > { %v535_v16 = vsel %vm534_vm3, %v532_v14, %v529_v13 }
 0x2bb   : > { %v537_v17 = vadd.f32 %v535_v16, %v509_v15 }
 0x2bd   : > { %v539_v18 = vsub.f32 %v537_v17, %v507_v54  ;;  %v543_v19 = vsub.f32 0.0, %v537_v17 }
 0x2bf   : > { %548 = vrot.lane.b32.xlu1 %v543_v19, %s664_s29  ;;  %v541_v23 = vsub.f32 0.0, %v539_v18 }
 0x329   : > { %v547_v21 = vpop.permute.xlu1 %546 }
 0x32a   : > { %v553_v22 = vsel %vm552_vm4, %v540_v20, %v547_v21 }
 0x32b   : > { %556 = vst.msk [vmem:[%s334_s12] sm:$0xff] %vm555_vm5, %v553_v22 }
 0x331   : > { %v549_v24 = vpop.permute.xlu1 %548 }
 0x332   : > { %v554_v25 = vsel %vm552_vm4, %v541_v23, %v549_v24 }
 0x333   : > { %557 = vst.msk [vmem:[%s334_s12 + $0x8] sm:$0xff] %vm555_vm5, %v554_v25 }
 0x334 PF: > { %s19_s30 = sadd.s32 1, %s661_s30  }
 0x335   : > { %p16_p4 = scmp.ge.s32.totalorder %s19_s30, 6  }
 0x337   :  { %18 = sbr.rel (!%p16_p4) target bundleno = 1 (0x1), region = 86 }

</bundles_post_ra>
